<compile_context>
chip_gen: v7x
topology: tpu7x:2x2x1
jax: 0.10.0
libtpu: 0.0.40
codegen_flags: <defaults>
</compile_context>

<pallas_src>
import jax
import jax.numpy as jnp
from jax.experimental import pallas as pl
from jax.experimental.pallas import tpu as pltpu


def _round_up(n: int, m: int) -> int:
    return ((n + m - 1) // m) * m


def _vmem_capacity_bytes() -> int:
    """Per-generation VMEM capacity (128 MiB v5e/v6e, 64 MiB v7x), with a
    conservative fallback if the query is unavailable."""
    try:
        info = pltpu.get_tpu_info()
        cap = getattr(info, "vmem_capacity_bytes", None)
        if cap:
            return int(cap)
    except Exception:
        pass
    return 64 * 1024 * 1024  # assume the smallest (v7x-class) VMEM


def _resident_spec(shape, index_map):
    """BlockSpec for an operand whose block index is constant across the grid:
    single-buffer it to save VMEM (double-buffering it is pure waste)."""
    try:
        return pl.BlockSpec(shape, index_map, pipeline_mode=pl.Buffered(1))
    except (TypeError, AttributeError):
        # older API surface without pipeline_mode — fall back to default
        return pl.BlockSpec(shape, index_map)


def _patch_embed_kernel(p_ref, w_ref, b_ref, o_ref):
    # p_ref: (tm, K_pad)    bf16 patch-pixel tile (ragged last block masked)
    # w_ref: (K_pad, E_pad) bf16 projection weight (resident, single-buffered)
    # b_ref: (1, E_pad)     f32 bias row           (resident, single-buffered)
    # o_ref: (tm, E_pad)    output tile (lane-dense store)
    acc = jnp.dot(p_ref[...], w_ref[...], preferred_element_type=jnp.float32)
    o_ref[...] = (acc + b_ref[...]).astype(o_ref.dtype)


def patch_embedding_pallas(x, weight, bias, patch_size,
                           out_dtype=jnp.bfloat16,
                           compute_dtype=jnp.bfloat16):
    """x: [B, C, H, W] (NCHW); weight: [E, C, p, p]; bias: [E].
    Returns [B, num_patches, E] == Conv2d(stride=kernel=p) + flatten/transpose."""
    B, C, H, W = x.shape
    E = weight.shape[0]
    p = patch_size
    Gh, Gw = H // p, W // p
    num_patches = Gh * Gw

    M = B * num_patches
    K = C * p * p
    K_pad = _round_up(K, 128)
    E_pad = _round_up(E, 128)
    cdb = jnp.dtype(compute_dtype).itemsize
    out_bytes = jnp.dtype(out_dtype).itemsize

    # --- patchify (layout only): cast first so the convert fuses into the copy
    xc = x.astype(compute_dtype)
    # [B, C, Gh, p, Gw, p] -> [B, Gh, Gw, C, p, p] -> [M, K]
    patches = xc.reshape(B, C, Gh, p, Gw, p).transpose(0, 2, 4, 1, 3, 5)
    patches = patches.reshape(M, K)
    if K_pad != K:
        # exact zero-pad of the contraction dim; emitted in the same fusion
        # region as the patchify copy (no standalone HBM pass)
        patches = jnp.pad(patches, ((0, 0), (0, K_pad - K)))

    # conv weight [E, C, p, p] -> [K, E] so O = P @ W matches Conv2d
    w_mat = weight.reshape(E, K).T.astype(compute_dtype)
    b_row = bias.astype(jnp.float32).reshape(1, E)
    if K_pad != K:
        w_mat = jnp.pad(w_mat, ((0, K_pad - K), (0, 0)))
    if E_pad != E:
        w_mat = jnp.pad(w_mat, ((0, 0), (0, E_pad - E)))
        b_row = jnp.pad(b_row, ((0, 0), (0, E_pad - E)))

    # --- VMEM footprint: double-buffered P/out tiles, single-buffered W/bias
    def footprint(t):
        return (2 * t * K_pad * cdb            # P tile (x2 pipeline buffers)
                + K_pad * E_pad * cdb          # W     (single-buffered)
                + 2 * t * E_pad * out_bytes    # out tile (x2 pipeline buffers)
                + E_pad * 4)                   # bias  (single-buffered)

    budget = max(8 << 20, int(_vmem_capacity_bytes() * 0.45))

    # --- M tile: big (amortize ~0.35us/step), MXU/sublane friendly, and with
    # at least 2 grid steps when M allows it (v7x megacore has 2 TensorCores)
    tm = 1024
    if M <= tm:
        tm = min(tm, max(128, _round_up(pl.cdiv(M, 2), 128)))
        if tm >= M:                       # can't get 2 useful steps
            tm = _round_up(M, 16)         # single (possibly padded) block
    while tm > 16 and footprint(tm) > budget:
        nxt = tm // 2
        tm = _round_up(nxt, 128) if nxt >= 128 else max(16, _round_up(nxt, 16))

    grid = (pl.cdiv(M, tm),)
    vmem_limit = int(max(16 << 20, footprint(tm) + (8 << 20)))

    out_flat = pl.pallas_call(
        _patch_embed_kernel,
        out_shape=jax.ShapeDtypeStruct((M, E_pad), out_dtype),
        grid_spec=pltpu.PrefetchScalarGridSpec(
            num_scalar_prefetch=0,
            grid=grid,
            in_specs=[
                pl.BlockSpec((tm, K_pad), lambda i: (i, 0)),        # P tile
                _resident_spec((K_pad, E_pad), lambda i: (0, 0)),   # W resident
                _resident_spec((1, E_pad), lambda i: (0, 0)),       # bias resident
            ],
            out_specs=pl.BlockSpec((tm, E_pad), lambda i: (i, 0)),
        ),
        compiler_params=pltpu.CompilerParams(
            dimension_semantics=("parallel",),
            vmem_limit_bytes=vmem_limit,
        ),
        cost_estimate=pl.CostEstimate(
            flops=2 * M * K_pad * E_pad,
            transcendentals=0,
            bytes_accessed=(M * K_pad * cdb          # P
                            + K_pad * E_pad * cdb    # W
                            + E_pad * 4              # bias
                            + M * E_pad * out_bytes),
        ),
    )(patches, w_mat, b_row)

    out = out_flat if E_pad == E else out_flat[:, :E]
    return out.reshape(B, num_patches, E)


def _reference(x, weight, bias, patch_size, out_dtype):
    """Pure-JAX reference == Conv2d(stride=kernel=p) + flatten/transpose, run
    with the same bf16 inputs / f32 accumulation the kernel uses."""
    out = jax.lax.conv_general_dilated(
        x.astype(jnp.bfloat16), weight.astype(jnp.bfloat16),
        window_strides=(patch_size, patch_size),
        padding="VALID",
        dimension_numbers=("NCHW", "OIHW", "NCHW"),
        preferred_element_type=jnp.float32,
    ) + bias.reshape(1, -1, 1, 1).astype(jnp.float32)
    B, E, Gh, Gw = out.shape
    return out.reshape(B, E, Gh * Gw).transpose(0, 2, 1).astype(out_dtype)


if __name__ == "__main__":
    # module config (small): image 16x16, patch 4, 4 channels, embed_dim 32
    image_size, patch_size, in_chans, embed_dim = 16, 4, 4, 32
    B = 2

    key = jax.random.PRNGKey(0)
    kx, kw, kb = jax.random.split(key, 3)

    x = jax.random.normal(kx, (B, in_chans, image_size, image_size), jnp.float32)
    weight = 0.02 * jax.random.normal(
        kw, (embed_dim, in_chans, patch_size, patch_size), jnp.float32)
    bias = 0.01 * jax.random.normal(kb, (embed_dim,), jnp.float32)

    fn = jax.jit(patch_embedding_pallas,
                 static_argnames=("patch_size", "out_dtype", "compute_dtype"))
    out = fn(x, weight, bias, patch_size=patch_size)
    out = jax.block_until_ready(out)

    ref = _reference(x, weight, bias, patch_size, out.dtype)
    assert out.shape == (B, (image_size // patch_size) ** 2, embed_dim), out.shape
    assert jnp.allclose(out.astype(jnp.float32), ref.astype(jnp.float32),
                        atol=2e-2, rtol=2e-2), "mismatch vs conv reference"

    print("KERNEL_OK")
</pallas_src>

<mosaic_0001>
module attributes {stable_mosaic.version = 11 : i64} {
  func.func @_patch_embed_kernel(%arg0: i32, %arg1: memref<32x128xbf16, #tpu.memory_space<vmem>>, %arg2: memref<128x128xbf16, #tpu.memory_space<vmem>>, %arg3: memref<1x128xf32, #tpu.memory_space<vmem>>, %arg4: memref<32x128xbf16, #tpu.memory_space<vmem>>) attributes {dimension_semantics = [#tpu.dimension_semantics<parallel>], iteration_bounds = array<i64: 1>, scalar_prefetch = 0 : i64, scratch_operands = 0 : i64, tpu.core_type = #tpu.core_type<tc>, window_params = [{transform_indices = @transform_0, window_bounds = array<i64: 32, 128>}, {pipeline_mode = #tpu.pipeline_mode<synchronous>, transform_indices = @transform_1, window_bounds = array<i64: 128, 128>}, {pipeline_mode = #tpu.pipeline_mode<synchronous>, transform_indices = @transform_2, window_bounds = array<i64: 1, 128>}, {transform_indices = @transform_3, window_bounds = array<i64: 32, 128>}]} {
    %c0 = arith.constant 0 : index
    %c0_0 = arith.constant 0 : index
    %0 = vector.load %arg1[%c0, %c0_0] : memref<32x128xbf16, #tpu.memory_space<vmem>>, vector<32x128xbf16>
    %c0_1 = arith.constant 0 : index
    %c0_2 = arith.constant 0 : index
    %1 = vector.load %arg2[%c0_1, %c0_2] : memref<128x128xbf16, #tpu.memory_space<vmem>>, vector<128x128xbf16>
    %cst = arith.constant dense<0.000000e+00> : vector<32x128xf32>
    %2 = tpu.matmul %0, %1, %cst {dimension_numbers = #tpu.dot_dimension_numbers<[1], [0], [0], [1], [0, 0, 1, 1], [], []>} : vector<32x128xbf16>, vector<128x128xbf16>, vector<32x128xf32> -> vector<32x128xf32>
    %c0_3 = arith.constant 0 : index
    %c0_4 = arith.constant 0 : index
    %3 = vector.load %arg3[%c0_3, %c0_4] : memref<1x128xf32, #tpu.memory_space<vmem>>, vector<1x128xf32>
    %4 = vector.broadcast %3 : vector<1x128xf32> to vector<32x128xf32>
    %5 = arith.addf %2, %4 : vector<32x128xf32>
    %6 = arith.truncf %5 : vector<32x128xf32> to vector<32x128xbf16>
    %c0_5 = arith.constant 0 : index
    %c0_6 = arith.constant 0 : index
    %7 = vector.load %arg4[%c0_5, %c0_6] : memref<32x128xbf16, #tpu.memory_space<vmem>>, vector<32x128xbf16>
    tpu.vector_store %arg4[%c0_5, %c0_6], %6 {strides = array<i32>} : memref<32x128xbf16, #tpu.memory_space<vmem>>, vector<32x128xbf16>,
    return
  }
  func.func @transform_0(%arg0: i32) -> (i32, i32) {
    %c0_i32 = arith.constant 0 : i32
    %c0_i32_0 = arith.constant 0 : i32
    return %arg0, %c0_i32 : i32, i32
  }
  func.func @transform_1(%arg0: i32) -> (i32, i32) {
    %c0_i32 = arith.constant 0 : i32
    %c0_i32_0 = arith.constant 0 : i32
    %c0_i32_1 = arith.constant 0 : i32
    return %c0_i32, %c0_i32_0 : i32, i32
  }
  func.func @transform_2(%arg0: i32) -> (i32, i32) {
    %c0_i32 = arith.constant 0 : i32
    %c0_i32_0 = arith.constant 0 : i32
    %c0_i32_1 = arith.constant 0 : i32
    return %c0_i32, %c0_i32_0 : i32, i32
  }
  func.func @transform_3(%arg0: i32) -> (i32, i32) {
    %c0_i32 = arith.constant 0 : i32
    %c0_i32_0 = arith.constant 0 : i32
    return %arg0, %c0_i32 : i32, i32
  }
}

</mosaic_0001>

<bundles_post_ra>
// kernel: patch_embedding_pallas.1
= control target key start
LH: loop header
LB: loop body
LE: loop exit
PB: predicated region body
PF: predicated region fallthrough
CT: control target
= control target key end

     0   :  { %s353_s0 = inlined_call_operand.vmem [shape: bf16[32,128], index: 0, kind: input, shape index: {}]   ;;  %s354_s1 = inlined_call_operand.vmem [shape: bf16[128,128], index: 1, kind: input, shape index: {}]   ;;  %s355_s2 = inlined_call_operand.vmem [shape: f32[1,128], index: 2, kind: input, shape index: {}]   ;;  %s356_s3 = inlined_call_operand.hbm [shape: bf16[32,128], index: 3, kind: output, shape index: {}]  }
   0x1   :  { %v251_v0 = vld [vmem:[%s354_s1] sm:$0xff]   ;;  %v252_v1 = vld [vmem:[%s354_s1 + $0x8] sm:$0xff]   ;;  %v253_v2 = vld [vmem:[%s354_s1 + $0x10] sm:$0xff]  }
   0x2   :  { %228 = vmatprep.subr.bf16.mxu0 %v251_v0  ;;  %v254_v3 = vld [vmem:[%s354_s1 + $0x18] sm:$0xff]   ;;  %v259_v4 = vld [vmem:[%s353_s0] sm:$0xff]  }
   0x3   :  { %229 = vmatpush3.bf16.msra.mxu0 %v251_v0  ;;  %244 = vmatprep.mubr.bf16.mxu0 %v259_v4 }
   0x4   :  { %230 = vmatprep.subr.bf16.mxu0 %v252_v1 }
   0x7   :  { %231 = vmatpush3.bf16.msra.mxu0 %v252_v1 }
   0x8   :  { %232 = vmatprep.subr.bf16.mxu0 %v253_v2 }
   0x9   :  { %8 = vsyncpa [#allocation3], 0  ;;  %v255_v5 = vld [vmem:[%s354_s1 + $0x20] sm:$0xff]   ;;  %v256_v6 = vld [vmem:[%s354_s1 + $0x28] sm:$0xff]   ;;  %s285_s7 = smov [#allocation2]  }
   0xa   :  { %v257_v7 = vld [vmem:[%s354_s1 + $0x30] sm:$0xff]   ;;  %v258_v8 = vld [vmem:[%s354_s1 + $0x38] sm:$0xff]   ;;  %v260_v9 = vld [vmem:[%s353_s0 + $0x8] sm:$0xff]   ;;  %s177_s8 = sshll.u32 %s285_s7, 4  ;;  %s178_s8 = int_to_ptr.vmem [resolvable:$true] %s177_s8 }
   0xb   :  { %233 = vmatpush3.bf16.msra.mxu0 %v253_v2  ;;  %v188_v11 = vld [vmem:[%s355_s2] ss:$0 sm:$0xff]  ;;  %s261_s0 = scalar_lea.vmem %s178_s8, 256  ;;  %p266_p1 = scmp.lt.s32.totalorder %s178_s8, %s178_s8 }
   0xc   :  { %234 = vmatprep.subr.bf16.mxu0 %v254_v3  ;;  %p262_p0 = scmp.ne.s32.totalorder %s178_s8, %s261_s0  ;;  %p267_p2 = scmp.lt.s32.totalorder %s261_s0, %s261_s0 }
   0xe   :  { %p268_p3 = por %p267_p2, %p266_p1 }
   0xf   :  { %235 = vmatpush3.bf16.msra.mxu0 %v254_v3 }
  0x10   :  { %236 = vmatprep.subr.bf16.mxu0 %v255_v5  ;;  %p269_p4 = pnand %p268_p3, %p262_p0 }
  0x13   :  { %237 = vmatpush3.bf16.msra.mxu0 %v255_v5 }
  0x14   :  { %238 = vmatprep.subr.bf16.mxu0 %v256_v6 }
  0x17   :  { %239 = vmatpush3.bf16.msra.mxu0 %v256_v6 }
  0x18   :  { %240 = vmatprep.subr.bf16.mxu0 %v257_v7 }
  0x1b   :  { %241 = vmatpush3.bf16.msra.mxu0 %v257_v7 }
  0x1c   :  { %242 = vmatprep.subr.bf16.mxu0 %v258_v8 }
  0x1f   :  { %243 = vmatpush3.bf16.msra.mxu0 %v258_v8 }
  0x22   :  { %245 = vmatmul.mubr.bf16.vlgmr.msra.gmra.mrb[0].mxu0 %v260_v9 }
  0xf5   :  { %v246_v10 = vpop.f32.mrb[0].mxu0 }
  0xf6   :  { %v137_v12 = vpop.f32.mrb[1].mxu0  ;;  %v146_v14 = vadd.f32 %v246_v10, %v188_v11 }
  0xf7   :  { %v247_v13 = vpop.f32.mrb[2].mxu0  ;;  %v138_v17 = vadd.f32 %v188_v11, %v137_v12 }
  0xf8   :  { %v149_v15 = vadd.f32 %v247_v13, %v188_v11  ;;  %v140_v16 = vpop.f32.mrb[3].mxu0 }
  0xf9   :  { %v141_v18 = vadd.f32 %v188_v11, %v140_v16 }
  0xfa   :  { %v215_v19 = vpack.c.bf16 %v149_v15, %v146_v14 }
  0xfb   :  { %v210_v20 = vpack.c.bf16 %v141_v18, %v138_v17 }
  0xfc   :  { %217 = vst [vmem:[#allocation2 + $0x8] sm:$0xff] %v215_v19  }
  0xfd   :  { %211 = vst [vmem:[#allocation2] sm:$0xff] %v210_v20  }
  0xfe   :  { %272 = shalt.err (!%p269_p4)
}
  0xff   :  { %s273_s9 = scalar_lea.hbm %s356_s3, 256 }
 0x100   :  { %p274_p5 = scmp.ne.s32.totalorder %s356_s3, %s273_s9  ;;  %p277_p6 = scmp.lt.u32.totalorder %s273_s9, %s356_s3 }
 0x102   :  { %p279_p7 = pnand %p277_p6, %p274_p5 }
 0x104   :  { %282 = shalt.err (!%p279_p7)
}
 0x105   :  { %s286_s14 = smov 64   ;;  %s287_s15 = smov 4  }
 0x106   :  { %183 = dma.vmem_to_hbm [thread:$0]  %s178_s8, 256, %s356_s3, [#allocation3], %s286_s14, %s286_s14, %s287_s15  }
 0x107   :  { %283 = dma.done.wait [#allocation3], 256  }
 0x108   :  { %284 = vsyncadd [#allocation3], 4294967040 }
 0x109   :  { %187 = vsyncpa [#allocation3], 1 }

</bundles_post_ra>
